<compile_context>
chip_gen: v7x
topology: tpu7x:2x2x1
jax: 0.10.0
libtpu: 0.0.40
codegen_flags: <defaults>
</compile_context>

<pallas_src>
import functools

import jax
import jax.numpy as jnp
import numpy as np
from jax import lax
from jax.experimental import pallas as pl
from jax.experimental.pallas import tpu as pltpu


# ----------------------------------------------------------------------------
# Kernel 1: 'original_model' path
#   img_feat 1x1 conv -> soft attention -> vocab projection, grid = (B, V//tv)
# ----------------------------------------------------------------------------
def _caption_kernel(x_ref, w_imgT_ref, b_imgT_ref, w_attT_ref, v_att_ref,
                    w_voc_ref, b_voc_ref, o_ref, ctx_sc):
    # axis 0: one sample per step ("parallel", uses both TCs on v7x)
    # axis 1: vocab tiles ("arbitrary"); conv/attention run only at j == 0.
    @pl.when(pl.program_id(1) == 0)
    def _():
        x = x_ref[0]                                                     # (C, P)
        # img_feat in transposed orientation: (D,C)@(C,P) -> (D,P); the
        # NCHW layout never leaves its natural order, no HBM transpose.
        feat_t = (jnp.dot(w_imgT_ref[...], x,
                          preferred_element_type=jnp.float32)
                  + b_imgT_ref[...])                                     # (D, P)
        h_t = jnp.tanh(jnp.dot(w_attT_ref[...], feat_t,
                               preferred_element_type=jnp.float32))      # (A, P)
        # lane-major scores: softmax reduces over the lane (pixel) axis.
        e = jnp.dot(v_att_ref[...], h_t,
                    preferred_element_type=jnp.float32)                  # (1, P)
        e = e - jnp.max(e, axis=-1, keepdims=True)
        p = jnp.exp(e)
        alpha = p / jnp.sum(p, axis=-1, keepdims=True)   # exact softmax norm
        # context: contract the pixel (lane) axes on the MXU (trans-B matmul).
        ctx_sc[...] = lax.dot_general(
            alpha, feat_t, (((1,), (1,)), ((), ())),
            preferred_element_type=jnp.float32)                          # (1, D)

    # vocab head: one 128+-wide tile per step, pipelined over j.
    o_ref[0] = (jnp.dot(ctx_sc[...], w_voc_ref[...],
                        preferred_element_type=jnp.float32)
                + b_voc_ref[...])                                        # (1, tv)


def _caption_impl(params, image, vocab_tile=512):
    """'original_model' path.  One pallas_call; grid = (B, V // tv)."""
    # TODO(synk): the real caption_decoder is an externally-injected
    # LSTM-with-attention module (not defined in this file); this is a synthetic
    # single-step soft-attention + vocab projection standing in for it.
    B, C, H, W = image.shape
    P = H * W
    D, V = params['w_vocab'].shape
    A = params['w_attT'].shape[0]
    # Vocab tile: 128-wide multiples keep stores unmasked.  At production V use
    # larger tiles on v6e (128 MiB VMEM) than v7x (64 MiB) and set
    # pltpu.CompilerParams(vmem_limit_bytes=...) with headroom.
    tv = min(V, vocab_tile)
    assert V % tv == 0 and tv % 128 == 0, "pad the vocab to a multiple of 128"

    x3d = image.reshape(B, C, P)     # free view of contiguous NCHW, no HBM copy

    out = pl.pallas_call(
        _caption_kernel,
        out_shape=jax.ShapeDtypeStruct((B, 1, V), jnp.float32),
        grid=(B, V // tv),
        in_specs=[
            pl.BlockSpec((1, C, P), lambda b, j: (b, 0, 0)),   # one sample's pixels
            pl.BlockSpec((D, C),    lambda b, j: (0, 0)),      # w_img^T (resident)
            pl.BlockSpec((D, 1),    lambda b, j: (0, 0)),      # b_img^T
            pl.BlockSpec((A, D),    lambda b, j: (0, 0)),      # w_att^T
            pl.BlockSpec((1, A),    lambda b, j: (0, 0)),      # v_att
            pl.BlockSpec((D, tv),   lambda b, j: (0, j)),      # vocab weight tile
            pl.BlockSpec((1, tv),   lambda b, j: (0, j)),      # vocab bias tile
        ],
        out_specs=pl.BlockSpec((1, 1, tv), lambda b, j: (b, 0, j)),
        scratch_shapes=[pltpu.VMEM((1, D), jnp.float32)],      # per-sample context
        compiler_params=pltpu.CompilerParams(
            dimension_semantics=("parallel", "arbitrary")),
    )(x3d, params['w_imgT'], params['b_imgT'], params['w_attT'],
      params['v_att'], params['w_vocab'], params['b_vocab'])
    return out.reshape(B, V)


# ----------------------------------------------------------------------------
# Kernel 2: 'EMOdetected_model' / encoder_fuse path, grid = (B,)
#   img_feat conv (+ emotion conv + label one-hot gather + fuse) per sample.
# ----------------------------------------------------------------------------
def _make_fuse_kernel(fuse_mode):
    need_emo = fuse_mode in ('cat', 'add', 'add_cat')
    need_add = fuse_mode in ('add', 'add_cat')
    need_fm = fuse_mode in ('cat', 'add_cat')

    def kernel(label_ref, x_ref, w_img_ref, b_img_ref, *rest):
        if need_emo:
            w_emo_ref, b_emo_ref, main_ref = rest[0], rest[1], rest[2]
            fm_ref = rest[3] if need_fm else None
        else:
            main_ref = rest[0]

        x = x_ref[0]                                                     # (C, P)
        # img_feat 1x1 conv: channel contraction as a trans-lhs MXU matmul,
        # so the NCHW->NHWC rearrange never touches HBM.
        feat = (lax.dot_general(x, w_img_ref[...], (((0,), (0,)), ((), ())),
                                preferred_element_type=jnp.float32)
                + b_img_ref[...])                                        # (P, D)

        if not need_emo:
            # encoder_fuse passthrough (mode string matches no fuse branch):
            # only the D image-feature columns are computed / stored.
            main_ref[0] = feat
            return

        lbl = label_ref[pl.program_id(0)]
        # emotion 1x1 conv over all E emotion channels (E is small).
        emo = (lax.dot_general(x, w_emo_ref[...], (((0,), (0,)), ((), ())),
                               preferred_element_type=jnp.float32)
               + b_emo_ref[...])                                         # (P, E)
        nE = emo.shape[-1]

        if need_add:
            # label[b] channel gather as an MXU (P,E)x(E,1) contraction (no
            # VALU where/select + XLU lane reduce).  Out-of-range label -> 0
            # (the PyTorch index would raise; behavioral difference only).
            onehot_col = (lax.broadcasted_iota(jnp.int32, (nE, 1), 0) == lbl
                          ).astype(jnp.float32)
            fm_col = jnp.dot(emo, onehot_col,
                             preferred_element_type=jnp.float32)         # (P, 1)
            main_ref[0] = feat + fm_col
        else:
            main_ref[0] = feat

        if need_fm:
            # lane-major copy of the selected map for the extra 'cat' column.
            # Second tiny (1,E)x(E,P) selection off the same emo tensor — the
            # conv runs once; this is cheaper/safer than an XLU (P,1)->(1,P)
            # transpose and keeps the fm store a dense (1, P) lane row.
            onehot_row = (lax.broadcasted_iota(jnp.int32, (1, nE), 1) == lbl
                          ).astype(jnp.float32)
            fm_ref[0] = lax.dot_general(
                onehot_row, emo, (((1,), (1,)), ((), ())),
                preferred_element_type=jnp.float32)                      # (1, P)

    return kernel


def _fused_encode_impl(params, image, label, fuse_mode):
    """img_feat + emotion_decoder + label gather + encoder_fuse, one pallas_call."""
    B, C, H, W = image.shape
    P = H * W
    D = params['w_img'].shape[1]
    E = params['w_emo'].shape[1]
    need_emo = fuse_mode in ('cat', 'add', 'add_cat')
    need_fm = fuse_mode in ('cat', 'add_cat')

    x3d = image.reshape(B, C, P)     # free view — no wrapper transpose

    in_specs = [pl.BlockSpec((1, C, P), lambda b, lbl: (b, 0, 0)),
                pl.BlockSpec((C, D),    lambda b, lbl: (0, 0)),
                pl.BlockSpec((1, D),    lambda b, lbl: (0, 0))]
    inputs = [x3d, params['w_img'], params['b_img']]
    if need_emo:
        in_specs += [pl.BlockSpec((C, E), lambda b, lbl: (0, 0)),
                     pl.BlockSpec((1, E), lambda b, lbl: (0, 0))]
        inputs += [params['w_emo'], params['b_emo']]

    main_shape = jax.ShapeDtypeStruct((B, P, D), jnp.float32)
    main_spec = pl.BlockSpec((1, P, D), lambda b, lbl: (b, 0, 0))
    if need_fm:
        out_shape = (main_shape, jax.ShapeDtypeStruct((B, 1, P), jnp.float32))
        out_specs = (main_spec, pl.BlockSpec((1, 1, P), lambda b, lbl: (b, 0, 0)))
    else:
        out_shape = main_shape
        out_specs = main_spec

    res = pl.pallas_call(
        _make_fuse_kernel(fuse_mode),
        out_shape=out_shape,
        grid_spec=pltpu.PrefetchScalarGridSpec(
            num_scalar_prefetch=1,          # label -> SMEM
            grid=(B,),                      # one sample per step
            in_specs=in_specs,
            out_specs=out_specs),
        compiler_params=pltpu.CompilerParams(
            dimension_semantics=("parallel",)),
    )(label.astype(jnp.int32), *inputs)

    if not need_fm:
        return res
    main, fm = res
    # The +1 feature column forces a (B,P,D)+(B,P,1) concat; doing it here keeps
    # every kernel store lane-dense.  Documented trade-off: at production D this
    # re-streams the main tensor once; a lane-padded single output would avoid it.
    return jnp.concatenate([main, fm.reshape(B, P, 1)], axis=-1)


# ----------------------------------------------------------------------------
# jitted forward (mode strings static -> single launch per forward)
# ----------------------------------------------------------------------------
@functools.partial(jax.jit, static_argnums=(1,))
def describe_model_forward(params, mode, image, label):
    if mode == 'original_model':
        return _caption_impl(params, image)
    elif mode == 'EMOdetected_model':
        # encoder_fuse is called with the mode string itself -> no fuse branch
        # matches -> passthrough reshape of img_feat (matches PyTorch).
        # TODO(synk): the original forward then calls caption_decoder(encoder)
        # with encoder still None in this branch (a latent bug); we return the
        # fused encoder features instead of faking it.
        return _fused_encode_impl(params, image, label, fuse_mode=mode)
    raise ValueError(mode)


@functools.partial(jax.jit, static_argnums=(3,))
def _fused_encode_jit(params, image, label, fuse_mode):
    return _fused_encode_impl(params, image, label, fuse_mode)


def fused_encode(params, image, label, fuse_mode):
    """encoder_fuse-style helper: returns (fused_encoder, fused_dim)."""
    fused = _fused_encode_jit(params, image, label, fuse_mode)
    D = params['w_img'].shape[1]
    fdim = D + 1 if fuse_mode in ('cat', 'add_cat') else D
    return fused, fdim


# ----------------------------------------------------------------------------
# Parameters (kernel-orientation copies prepared once, not per forward)
# ----------------------------------------------------------------------------
def init_params(key, C, D, E, A, V):
    ks = jax.random.split(key, 8)

    def nrm(k, shape, scale=0.2):
        return (scale * jax.random.normal(k, shape)).astype(jnp.float32)

    w_img = nrm(ks[0], (C, D)); b_img = nrm(ks[1], (1, D), 0.05)
    w_emo = nrm(ks[2], (C, E)); b_emo = nrm(ks[3], (1, E), 0.05)
    w_att = nrm(ks[4], (D, A)); v_att = nrm(ks[5], (1, A))
    w_voc = nrm(ks[6], (D, V)); b_voc = nrm(ks[7], (1, V), 0.05)
    return {
        'w_img': w_img, 'b_img': b_img,
        'w_emo': w_emo, 'b_emo': b_emo,
        'w_att': w_att, 'v_att': v_att,
        'w_vocab': w_voc, 'b_vocab': b_voc,
        # kernel-orientation copies (hoisted out of the per-call path):
        'w_imgT': jnp.transpose(w_img),    # (D, C)
        'b_imgT': jnp.transpose(b_img),    # (D, 1)
        'w_attT': jnp.transpose(w_att),    # (A, D)
    }


# ----------------------------------------------------------------------------
# Pure-JAX references (verification only)
# ----------------------------------------------------------------------------
def _ref_pointwise(x_nchw, w, b):
    x = jnp.transpose(x_nchw, (0, 2, 3, 1))
    return jnp.einsum('bhwc,cd->bhwd', x, w, precision='highest') + b[0]


def _ref_caption(params, enc):
    B = enc.shape[0]
    D = enc.shape[-1]
    encf = enc.reshape(B, -1, D)
    h = jnp.tanh(jnp.einsum('bpd,da->bpa', encf, params['w_att'],
                            precision='highest'))
    e = jnp.einsum('bpa,a->bp', h, params['v_att'][0], precision='highest')
    alpha = jax.nn.softmax(e, axis=1)
    ctx = jnp.einsum('bp,bpd->bd', alpha, encf, precision='highest')
    return jnp.dot(ctx, params['w_vocab'], precision='highest') + params['b_vocab'][0]


def _ref_fuse(enc, emo_area, label, mode):
    B = enc.shape[0]
    D = enc.shape[-1]
    encf = enc.reshape(B, -1, D)
    fm = emo_area[jnp.arange(B), label]                    # (B, H, W)
    fm = jnp.transpose(fm[:, None, :, :], (0, 2, 3, 1)).reshape(B, -1, 1)
    if mode == 'cat':
        return jnp.concatenate([encf, fm], axis=-1)
    if mode == 'add':
        return encf + fm
    if mode == 'add_cat':
        return jnp.concatenate([encf + fm, fm], axis=-1)
    return encf


if __name__ == "__main__":
    # Small but lane-friendly toy shapes (D and V multiples of 128 keep every
    # kernel store unmasked; P = 16*16 = 256 keeps the fm row lane-dense).
    B, C, H, W = 2, 4, 16, 16
    D, E, A, V = 128, 8, 64, 128

    key = jax.random.PRNGKey(0)
    k_img, k_param = jax.random.split(key)
    image = jax.random.normal(k_img, (B, C, H, W), jnp.float32)   # NCHW like PyTorch
    label = jnp.array([3, 5], dtype=jnp.int32)
    params = init_params(k_param, C, D, E, A, V)

    # --- mode == 'original_model': fused img_feat -> caption head ------------
    logits = describe_model_forward(params, 'original_model', image, label)
    jax.block_until_ready(logits)

    # --- mode == 'EMOdetected_model': conv + passthrough encoder_fuse --------
    fused_pass = describe_model_forward(params, 'EMOdetected_model', image, label)
    jax.block_until_ready(fused_pass)

    # --- exercise the encoder_fuse branches ('cat' / 'add' / 'add_cat') ------
    fuse_results = []
    for fm_mode in ('cat', 'add', 'add_cat'):
        fused, fdim = fused_encode(params, image, label, fuse_mode=fm_mode)
        jax.block_until_ready(fused)
        fuse_results.append((fm_mode, fused, fdim))

    # --- verify against pure-JAX references ----------------------------------
    ref_enc = _ref_pointwise(image, params['w_img'], params['b_img'])
    ref_logits = _ref_caption(params, ref_enc)
    np.testing.assert_allclose(np.asarray(logits), np.asarray(ref_logits),
                               rtol=1e-2, atol=1e-2)

    ref_emo = jnp.transpose(
        _ref_pointwise(image, params['w_emo'], params['b_emo']), (0, 3, 1, 2))
    for fm_mode, fused, fdim in fuse_results:
        ref_f = _ref_fuse(ref_enc, ref_emo, label, fm_mode)
        np.testing.assert_allclose(np.asarray(fused), np.asarray(ref_f),
                                   rtol=1e-2, atol=1e-2)
        assert fdim == ref_f.shape[-1]

    np.testing.assert_allclose(np.asarray(fused_pass),
                               np.asarray(ref_enc.reshape(B, -1, D)),
                               rtol=1e-2, atol=1e-2)

    print("KERNEL_OK")
</pallas_src>

<mosaic_0001>
module attributes {stable_mosaic.version = 11 : i64} {
  func.func @_caption_kernel(%arg0: i32, %arg1: i32, %arg2: memref<1x4x256xf32, #tpu.memory_space<vmem>>, %arg3: memref<128x4xf32, #tpu.memory_space<vmem>>, %arg4: memref<128x1xf32, #tpu.memory_space<vmem>>, %arg5: memref<64x128xf32, #tpu.memory_space<vmem>>, %arg6: memref<1x64xf32, #tpu.memory_space<vmem>>, %arg7: memref<128x128xf32, #tpu.memory_space<vmem>>, %arg8: memref<1x128xf32, #tpu.memory_space<vmem>>, %arg9: memref<1x1x128xf32, #tpu.memory_space<vmem>>, %arg10: memref<1x128xf32, #tpu.memory_space<vmem>>) attributes {dimension_semantics = [#tpu.dimension_semantics<parallel>, #tpu.dimension_semantics<arbitrary>], iteration_bounds = array<i64: 2, 1>, scalar_prefetch = 0 : i64, scratch_operands = 1 : i64, tpu.core_type = #tpu.core_type<tc>, window_params = [{transform_indices = @transform_0, window_bounds = array<i64: 1, 4, 256>}, {pipeline_mode = #tpu.pipeline_mode<synchronous>, transform_indices = @transform_1, window_bounds = array<i64: 128, 4>}, {pipeline_mode = #tpu.pipeline_mode<synchronous>, transform_indices = @transform_2, window_bounds = array<i64: 128, 1>}, {pipeline_mode = #tpu.pipeline_mode<synchronous>, transform_indices = @transform_3, window_bounds = array<i64: 64, 128>}, {pipeline_mode = #tpu.pipeline_mode<synchronous>, transform_indices = @transform_4, window_bounds = array<i64: 1, 64>}, {transform_indices = @transform_5, window_bounds = array<i64: 128, 128>}, {transform_indices = @transform_6, window_bounds = array<i64: 1, 128>}, {transform_indices = @transform_7, window_bounds = array<i64: 1, 1, 128>}]} {
    %c0_i32 = arith.constant 0 : i32
    %0 = arith.cmpi eq, %arg1, %c0_i32 : i32
    %1 = arith.extui %0 : i1 to i32
    %c0_i32_0 = arith.constant 0 : i32
    %2 = arith.cmpi ne, %1, %c0_i32_0 : i32
    scf.if %2 {
      %c0_9 = arith.constant 0 : index
      %c0_10 = arith.constant 0 : index
      %c0_11 = arith.constant 0 : index
      %11 = vector.load %arg2[%c0_9, %c0_10, %c0_11] : memref<1x4x256xf32, #tpu.memory_space<vmem>>, vector<1x4x256xf32>
      %12 = vector.shape_cast %11 : vector<1x4x256xf32> to vector<4x256xf32>
      %c0_12 = arith.constant 0 : index
      %c0_13 = arith.constant 0 : index
      %13 = vector.load %arg3[%c0_12, %c0_13] : memref<128x4xf32, #tpu.memory_space<vmem>>, vector<128x4xf32>
      %cst_14 = arith.constant dense<0.000000e+00> : vector<128x256xf32>
      %14 = tpu.matmul %13, %12, %cst_14 {dimension_numbers = #tpu.dot_dimension_numbers<[1], [0], [0], [1], [0, 0, 1, 1], [], []>} : vector<128x4xf32>, vector<4x256xf32>, vector<128x256xf32> -> vector<128x256xf32>
      %c0_15 = arith.constant 0 : index
      %c0_16 = arith.constant 0 : index
      %15 = vector.load %arg4[%c0_15, %c0_16] : memref<128x1xf32, #tpu.memory_space<vmem>>, vector<128x1xf32>
      %16 = vector.broadcast %15 : vector<128x1xf32> to vector<128x256xf32>
      %17 = arith.addf %14, %16 : vector<128x256xf32>
      %c0_17 = arith.constant 0 : index
      %c0_18 = arith.constant 0 : index
      %18 = vector.load %arg5[%c0_17, %c0_18] : memref<64x128xf32, #tpu.memory_space<vmem>>, vector<64x128xf32>
      %cst_19 = arith.constant dense<0.000000e+00> : vector<64x256xf32>
      %19 = tpu.matmul %18, %17, %cst_19 {dimension_numbers = #tpu.dot_dimension_numbers<[1], [0], [0], [1], [0, 0, 1, 1], [], []>} : vector<64x128xf32>, vector<128x256xf32>, vector<64x256xf32> -> vector<64x256xf32>
      %20 = math.tanh %19 : vector<64x256xf32>
      %c0_20 = arith.constant 0 : index
      %c0_21 = arith.constant 0 : index
      %21 = vector.load %arg6[%c0_20, %c0_21] : memref<1x64xf32, #tpu.memory_space<vmem>>, vector<1x64xf32>
      %cst_22 = arith.constant dense<0.000000e+00> : vector<1x256xf32>
      %22 = tpu.matmul %21, %20, %cst_22 {dimension_numbers = #tpu.dot_dimension_numbers<[1], [0], [0], [1], [0, 0, 1, 1], [], []>} : vector<1x64xf32>, vector<64x256xf32>, vector<1x256xf32> -> vector<1x256xf32>
      %cst_23 = arith.constant dense<0xFF800000> : vector<1xf32>
      %23 = vector.multi_reduction <maximumf>, %22, %cst_23 [1] : vector<1x256xf32> to vector<1xf32>
      %24 = vector.shape_cast %23 : vector<1xf32> to vector<1x1xf32>
      %25 = vector.broadcast %24 : vector<1x1xf32> to vector<1x256xf32>
      %26 = arith.subf %22, %25 : vector<1x256xf32>
      %27 = math.exp %26 : vector<1x256xf32>
      %cst_24 = arith.constant dense<0.000000e+00> : vector<1xf32>
      %28 = vector.multi_reduction <add>, %27, %cst_24 [1] : vector<1x256xf32> to vector<1xf32>
      %29 = vector.shape_cast %28 : vector<1xf32> to vector<1x1xf32>
      %30 = vector.broadcast %29 : vector<1x1xf32> to vector<1x256xf32>
      %31 = arith.divf %27, %30 : vector<1x256xf32>
      %cst_25 = arith.constant dense<0.000000e+00> : vector<1x128xf32>
      %32 = tpu.matmul %31, %17, %cst_25 {dimension_numbers = #tpu.dot_dimension_numbers<[1], [1], [0], [0], [0, 0, 1, 0], [], []>} : vector<1x256xf32>, vector<128x256xf32>, vector<1x128xf32> -> vector<1x128xf32>
      %c0_26 = arith.constant 0 : index
      %c0_27 = arith.constant 0 : index
      %33 = vector.load %arg10[%c0_26, %c0_27] : memref<1x128xf32, #tpu.memory_space<vmem>>, vector<1x128xf32>
      tpu.vector_store %arg10[%c0_26, %c0_27], %32 {strides = array<i32>} : memref<1x128xf32, #tpu.memory_space<vmem>>, vector<1x128xf32>,
    } else {
    }
    %c0 = arith.constant 0 : index
    %c0_1 = arith.constant 0 : index
    %3 = vector.load %arg10[%c0, %c0_1] : memref<1x128xf32, #tpu.memory_space<vmem>>, vector<1x128xf32>
    %c0_2 = arith.constant 0 : index
    %c0_3 = arith.constant 0 : index
    %4 = vector.load %arg7[%c0_2, %c0_3] : memref<128x128xf32, #tpu.memory_space<vmem>>, vector<128x128xf32>
    %cst = arith.constant dense<0.000000e+00> : vector<1x128xf32>
    %5 = tpu.matmul %3, %4, %cst {dimension_numbers = #tpu.dot_dimension_numbers<[1], [0], [0], [1], [0, 0, 1, 1], [], []>} : vector<1x128xf32>, vector<128x128xf32>, vector<1x128xf32> -> vector<1x128xf32>
    %c0_4 = arith.constant 0 : index
    %c0_5 = arith.constant 0 : index
    %6 = vector.load %arg8[%c0_4, %c0_5] : memref<1x128xf32, #tpu.memory_space<vmem>>, vector<1x128xf32>
    %7 = arith.addf %5, %6 : vector<1x128xf32>
    %c0_6 = arith.constant 0 : index
    %c0_7 = arith.constant 0 : index
    %c0_8 = arith.constant 0 : index
    %8 = vector.load %arg9[%c0_6, %c0_7, %c0_8] : memref<1x1x128xf32, #tpu.memory_space<vmem>>, vector<1x1x128xf32>
    %9 = vector.shape_cast %8 : vector<1x1x128xf32> to vector<1x128xf32>
    %10 = vector.shape_cast %7 : vector<1x128xf32> to vector<1x1x128xf32>
    tpu.vector_store %arg9[%c0_6, %c0_7, %c0_8], %10 {strides = array<i32>} : memref<1x1x128xf32, #tpu.memory_space<vmem>>, vector<1x1x128xf32>,
    return
  }
  func.func @transform_0(%arg0: i32, %arg1: i32) -> (i32, i32, i32) {
    %c0_i32 = arith.constant 0 : i32
    %c0_i32_0 = arith.constant 0 : i32
    %c0_i32_1 = arith.constant 0 : i32
    return %arg0, %c0_i32, %c0_i32_0 : i32, i32, i32
  }
  func.func @transform_1(%arg0: i32, %arg1: i32) -> (i32, i32) {
    %c0_i32 = arith.constant 0 : i32
    %c0_i32_0 = arith.constant 0 : i32
    %c0_i32_1 = arith.constant 0 : i32
    return %c0_i32, %c0_i32_0 : i32, i32
  }
  func.func @transform_2(%arg0: i32, %arg1: i32) -> (i32, i32) {
    %c0_i32 = arith.constant 0 : i32
    %c0_i32_0 = arith.constant 0 : i32
    %c0_i32_1 = arith.constant 0 : i32
    return %c0_i32, %c0_i32_0 : i32, i32
  }
  func.func @transform_3(%arg0: i32, %arg1: i32) -> (i32, i32) {
    %c0_i32 = arith.constant 0 : i32
    %c0_i32_0 = arith.constant 0 : i32
    %c0_i32_1 = arith.constant 0 : i32
    return %c0_i32, %c0_i32_0 : i32, i32
  }
  func.func @transform_4(%arg0: i32, %arg1: i32) -> (i32, i32) {
    %c0_i32 = arith.constant 0 : i32
    %c0_i32_0 = arith.constant 0 : i32
    %c0_i32_1 = arith.constant 0 : i32
    return %c0_i32, %c0_i32_0 : i32, i32
  }
  func.func @transform_5(%arg0: i32, %arg1: i32) -> (i32, i32) {
    %c0_i32 = arith.constant 0 : i32
    %c0_i32_0 = arith.constant 0 : i32
    return %c0_i32, %arg1 : i32, i32
  }
  func.func @transform_6(%arg0: i32, %arg1: i32) -> (i32, i32) {
    %c0_i32 = arith.constant 0 : i32
    %c0_i32_0 = arith.constant 0 : i32
    return %c0_i32, %arg1 : i32, i32
  }
  func.func @transform_7(%arg0: i32, %arg1: i32) -> (i32, i32, i32) {
    %c0_i32 = arith.constant 0 : i32
    %c0_i32_0 = arith.constant 0 : i32
    return %arg0, %c0_i32, %arg1 : i32, i32, i32
  }
}

</mosaic_0001>

<bundles_post_ra>
// kernel: describe_model_forward.1
= control target key start
LH: loop header
LB: loop body
LE: loop exit
PB: predicated region body
PF: predicated region fallthrough
CT: control target
= control target key end

     0   :  { %12 = vsyncpa [#allocation4], 0  ;;  %s1898_s0 = inlined_call_operand.vmem [shape: f32[2,4,256], index: 0, kind: input, shape index: {}]   ;;  %s1899_s1 = inlined_call_operand.vmem [shape: f32[128,4], index: 1, kind: input, shape index: {}]   ;;  %s1900_s2 = inlined_call_operand.vmem [shape: f32[128,1], index: 2, kind: input, shape index: {}]   ;;  %s1901_s3 = inlined_call_operand.vmem [shape: f32[64,128], index: 3, kind: input, shape index: {}]   ;;  %s1902_s4 = inlined_call_operand.vmem [shape: f32[1,64], index: 4, kind: input, shape index: {}]   ;;  %s1903_s5 = inlined_call_operand.vmem [shape: f32[128,128], index: 5, kind: input, shape index: {}]   ;;  %s1904_s6 = inlined_call_operand.vmem [shape: f32[1,128], index: 6, kind: input, shape index: {}]   ;;  %s1905_s7 = inlined_call_operand.hbm [shape: f32[2,1,128], index: 7, kind: output, shape index: {}]  }
   0x1   :  { %14 = vsyncpa [#allocation4 + $0x1], 0  ;;  %s1566_s24 = smov 0   ;;  %s1568_s25 = smov 0  }
   0x2   :  { %s1570_s26 = smov 0   ;;  %s1572_s27 = smov 0  }
   0x3   :  { %s1574_s28 = smov 0   ;;  %s1576_s29 = smov 0  }
   0x4 LB: > { %s1153_s30 = sadd.s32 4294967295, %s1519_s29   ;;  %s1154_s8 = sadd.s32 4294967294, %s1519_s29   ;;  %s1519_s29 = sphi %s1576_s29, %s20_s29   ;;  %s1515_s28 = sphi %s1574_s28, %s1912_s28   ;;  %s1511_s27 = sphi %s1572_s27, %s1911_s27   ;;  %s1507_s26 = sphi %s1570_s26, %s1910_s26   ;;  %s1503_s25 = sphi %s1568_s25, %s1909_s25   ;;  %s1499_s24 = sphi %s1566_s24, %s1908_s24  }
   0x5   : > { %s32_s9 = sadd.s32 1, %s1515_s28  ;;  %s203_s10 = sadd.s32 1, %s1507_s26 }
   0x6   : > { %p34_p0 = scmp.ge.s32.totalorder %s32_s9, 2  ;;  %p213_p1 = scmp.ne.s32.totalorder %s1507_s26, %s1503_s25 }
   0x7   : > { %p214_p2 = scmp.eq.s32.totalorder %s1153_s30, 1  ;;  %p219_p3 = scmp.ne.s32.totalorder %s1503_s25, %s1499_s24 }
   0x8   : > { %s1914_s9 = smov (%p34_p0, %s32_s9), 0  ;;  %p220_p5 = scmp.eq.s32.totalorder %s1154_s8, 1 }
   0x9   : > { %p1606_p4 = por %p214_p2, %p213_p1  ;;  %s198_s12 = ssub.s32 %s1515_s28, %s1914_s9 }
   0xa   : > { %p1159_p6 = scmp.ge.s32.totalorder %s1519_s29, 1  ;;  %p201_p7 = scmp.eq.s32.totalorder %s198_s12, 0 }
   0xb   : > { %p1613_p8 = por %p220_p5, %p219_p3  ;;  %p271_p9 = scmp.lt.s32.totalorder %s1519_s29, 3 }
   0xc   : > { %s1619_s14 = scalar_select %p201_p7, %s1507_s26, %s203_s10  }
   0xd   : > { %p272_p10 = pnand %p1159_p6, %p271_p9 }
   0xe   : > { %p309_p11 = scmp.lt.s32.totalorder (!%p272_p10), %s1511_s27, 1  ;;  %v1521_v0 = vmov (!%p272_p10), 0.0   ;;  %v1522_v1 = vmov (!%p272_p10), 0   ;;  %v342_v2 = vld [vmem:[%s1900_s2] sm:$0xff] (!%p272_p10)  ;;  %vm489_vm0 = vcmask (!%p272_p10), 1043456   ;;  %v344_v4 = vld [vmem:[%s1900_s2 + $0x10] sm:$0xff] (!%p272_p10) }
   0xf   : > { %275 = sbr.rel (%p272_p10) target bundleno = 1551 (0x60f), region = 48  ;;  %558 = vmatprep.mubr.f32.mxu0 (!%p272_p10), %v1521_v0  ;;  %727 = vmatprep.mubr.f32.mxu1 (!%p272_p10), %v1521_v0  ;;  %v343_v6 = vld [vmem:[%s1900_s2 + $0x8] sm:$0xff] (!%p272_p10)  ;;  %v326_v7 = vld [vmem:[%s1899_s1] sm:$0xff] (!%p272_p10)  ;;  %vm440_vm1 = vcmask (!%p272_p10), 31744   ;;  %v345_v8 = vld [vmem:[%s1900_s2 + $0x18] sm:$0xff] (!%p272_p10)  ;;  %vm793_vm2 = vcmask (!%p272_p10), 523264  }
  0x10   : > { %1400 = vset.pattern.permute.xlu0 (!%p272_p10), %v1522_v1  ;;  %1401 = vset.pattern.permute.xlu1 (!%p272_p10), %v1522_v1  ;;  %v346_v9 = vld [vmem:[%s1900_s2 + $0x20] sm:$0xff] (!%p272_p10)  ;;  %v327_v10 = vld [vmem:[%s1899_s1 + $0x8] sm:$0xff] (!%p272_p10)  ;;  %v348_v12 = vld [vmem:[%s1900_s2 + $0x30] sm:$0xff] (!%p272_p10)  ;;  %vm868_vm3 = vcmask (!%p272_p10), 1040384   ;;  %vm1524_vm4 = vmmov (!%p272_p10), 0   ;;  %s307_s17 = sand.u32 (!%p272_p10), 1, %s1503_s25  }
  0x11   : > { %360 = vperm.xlu0 (!%p272_p10), %1400, %v342_v2   ;;  %370 = vperm.xlu1 (!%p272_p10), %1401, %v344_v4   ;;  %v347_v11 = vld [vmem:[%s1900_s2 + $0x28] sm:$0xff] (!%p272_p10)  ;;  %v328_v13 = vld [vmem:[%s1899_s1 + $0x10] sm:$0xff] (!%p272_p10)  ;;  %v349_v14 = vld [vmem:[%s1900_s2 + $0x38] sm:$0xff] (!%p272_p10)  ;;  %s1181_s20 = sshll.u32 (!%p272_p10), %s1511_s27, 4  ;;  %s308_s21 = scalar_lea.vmem (!%p272_p10), [#allocation3], %s307_s17 }
  0x12   : > { %v350_v15 = vld [vmem:[%s1900_s2 + $0x40] sm:$0xff] (!%p272_p10)  ;;  %v329_v16 = vld [vmem:[%s1899_s1 + $0x18] sm:$0xff] (!%p272_p10)  ;;  %v351_v17 = vld [vmem:[%s1900_s2 + $0x48] sm:$0xff] (!%p272_p10)  ;;  %s1062_s22 = sshll.u32 (!%p272_p10), %s308_s21, 4  ;;  %s1851_s8 = scalar_lea.hbm (!%p272_p10), %s1905_s7, %s1181_s20  ;;  %s1853_s22 = int_to_ptr.vmem [resolvable:$true] %s1062_s22 }
  0x13   : > { %v352_v18 = vld [vmem:[%s1900_s2 + $0x50] sm:$0xff] (!%p272_p10)  ;;  %v330_v19 = vld [vmem:[%s1899_s1 + $0x20] sm:$0xff] (!%p272_p10)  ;;  %v353_v20 = vld [vmem:[%s1900_s2 + $0x58] sm:$0xff] (!%p272_p10)  ;;  %s1049_s10 = scalar_lea.sflag (!%p272_p10), [#allocation4], %s307_s17  ;;  %s1441_s12 = scalar_lea.vmem (!%p272_p10), %s1853_s22, 16 }
  0x14   : > { %v354_v21 = vld [vmem:[%s1900_s2 + $0x60] sm:$0xff] (!%p272_p10)  ;;  %v331_v22 = vld [vmem:[%s1899_s1 + $0x28] sm:$0xff] (!%p272_p10)  ;;  %v356_v24 = vld [vmem:[%s1900_s2 + $0x70] sm:$0xff] (!%p272_p10)  ;;  %p1442_p12 = scmp.ne.s32.totalorder (!%p272_p10), %s1853_s22, %s1441_s12 }
  0x15   : > { %365 = vperm.xlu0 (!%p272_p10), %1400, %v343_v6   ;;  %375 = vperm.xlu1 (!%p272_p10), %1401, %v345_v8   ;;  %v355_v23 = vld [vmem:[%s1900_s2 + $0x68] sm:$0xff] (!%p272_p10)  ;;  %v332_v25 = vld [vmem:[%s1899_s1 + $0x30] sm:$0xff] (!%p272_p10)  ;;  %v357_v26 = vld [vmem:[%s1900_s2 + $0x78] sm:$0xff] (!%p272_p10) }
  0x16   : > { %s310_s15 = scalar_select %p309_p11, %s1511_s27, 1  ;;  %v333_v27 = vld [vmem:[%s1899_s1 + $0x38] sm:$0xff]  ;;  %v334_v28 = vld [vmem:[%s1899_s1 + $0x40] sm:$0xff]  ;;  %v335_v29 = vld [vmem:[%s1899_s1 + $0x48] sm:$0xff] }
  0x17   : > { %v336_v30 = vld [vmem:[%s1899_s1 + $0x50] sm:$0xff]  ;;  %v337_v31 = vld [vmem:[%s1899_s1 + $0x58] sm:$0xff]  ;;  %v338_v32 = vld [vmem:[%s1899_s1 + $0x60] sm:$0xff]  ;;  %p1443_p13 = pnand %p1442_p12, %p1606_p4  ;;  %s1525_s27 = smov [#allocation3]  }
  0x18   : > { %s1184_s16 = sshll.u32 %s310_s15, 3  ;;  %v339_v33 = vld [vmem:[%s1899_s1 + $0x68] sm:$0xff]  ;;  %v340_v34 = vld [vmem:[%s1899_s1 + $0x70] sm:$0xff]  ;;  %v341_v35 = vld [vmem:[%s1899_s1 + $0x78] sm:$0xff]  ;;  %s1445_s15 = sshll.u32 %s1525_s27, 4  ;;  %s1446_s15 = int_to_ptr.vmem [resolvable:$false] %s1445_s15 }
  0x19   : > { %s313_s19 = scalar_lea.vmem %s1898_s0, %s1184_s16  ;;  %380 = vperm.xlu0 %1400, %v346_v9   ;;  %385 = vperm.xlu1 %1401, %v347_v11   ;;  %p1444_p0 = pneg %p1443_p13 }
  0x1a   : > { %v325_v3 = vld [vmem:[%s313_s19] sm:$0xff]  ;;  %s1447_s16 = scalar_lea.vmem %s1446_s15, 32  ;;  %p1448_p1 = scmp.lt.s32.totalorder %s1853_s22, %s1446_s15 }
  0x1b   : > { %v439_v5 = vcombine.high %v325_v3, %v325_v3  ;;  %p1449_p2 = scmp.lt.s32.totalorder %s1447_s16, %s1441_s12 }
  0x1d   : > { %1162 = vmatprep.subr.msk.mxu0 %vm489_vm0, %v439_v5  ;;  %390 = vperm.xlu0 %1400, %v348_v12   ;;  %p1450_p3 = por %p1449_p2, %p1448_p1 }
  0x1e   : > { %1163 = vmatpush1.msk.msra.mxu0 %vm489_vm0, %v325_v3  ;;  %395 = vperm.xlu1 %1401, %v349_v14  }
  0x1f   : > { %1164 = vmatmul.mubr.msk.f32.vlgmr.msra.gmra.mrb[0].mxu0 %vm440_vm1, %v326_v7  ;;  %p1451_p5 = pnand %p1450_p3, %p1444_p0 }
  0x20   : > { %564 = vmatprep.mubr.f32.mxu0 %v1521_v0 }
  0x21   : > { %400 = vperm.xlu0 %1400, %v350_v15  }
  0x22   : > { %405 = vperm.xlu1 %1401, %v351_v17  }
  0x23   : > { %1165 = vmatmul.mubr.msk.f32.gmra.mrb[2].mxu0 %vm440_vm1, %v327_v10 }
  0x24   : > { %570 = vmatprep.mubr.f32.mxu0 %v1521_v0 }
  0x25   : > { %410 = vperm.xlu0 %1400, %v352_v18  }
  0x26   : > { %415 = vperm.xlu1 %1401, %v353_v20  }
  0x27   : > { %1166 = vmatmul.mubr.msk.f32.gmra.mrb[4].mxu0 %vm440_vm1, %v328_v13 }
  0x28   : > { %576 = vmatprep.mubr.f32.mxu0 %v1521_v0 }
  0x29   : > { %420 = vperm.xlu0 %1400, %v354_v21  }
  0x2a   : > { %425 = vperm.xlu1 %1401, %v355_v23  }
  0x2b   : > { %1167 = vmatmul.mubr.msk.f32.gmra.mrb[6].mxu0 %vm440_vm1, %v329_v16 }
  0x2c   : > { %582 = vmatprep.mubr.f32.mxu0 %v1521_v0 }
  0x2d   : > { %430 = vperm.xlu0 %1400, %v356_v24  }
  0x2e   : > { %435 = vperm.xlu1 %1401, %v357_v26  }
  0x2f   : > { %1168 = vmatmul.mubr.msk.f32.gmra.mrb[8].mxu0 %vm440_vm1, %v330_v19 }
  0x30   : > { %588 = vmatprep.mubr.f32.mxu0 %v1521_v0 }
  0x33   : > { %1169 = vmatmul.mubr.msk.f32.gmra.mrb[10].mxu0 %vm440_vm1, %v331_v22 }
  0x34   : > { %594 = vmatprep.mubr.f32.mxu0 %v1521_v0 }
  0x37   : > { %1170 = vmatmul.mubr.msk.f32.gmra.mrb[12].mxu0 %vm440_vm1, %v332_v25 }
  0x38   : > { %600 = vmatprep.mubr.f32.mxu0 %v1521_v0 }
  0x3b   : > { %1171 = vmatmul.mubr.msk.f32.gmra.mrb[14].mxu0 %vm440_vm1, %v333_v27 }
  0x3c   : > { %606 = vmatprep.mubr.f32.mxu0 %v1521_v0 }
  0x3f   : > { %1172 = vmatmul.mubr.msk.f32.gmra.mrb[16].mxu0 %vm440_vm1, %v334_v28 }
  0x40   : > { %612 = vmatprep.mubr.f32.mxu0 %v1521_v0 }
  0x43   : > { %1173 = vmatmul.mubr.msk.f32.gmra.mrb[18].mxu0 %vm440_vm1, %v335_v29 }
  0x44   : > { %618 = vmatprep.mubr.f32.mxu0 %v1521_v0 }
  0x47   : > { %1174 = vmatmul.mubr.msk.f32.gmra.mrb[20].mxu0 %vm440_vm1, %v336_v30 }
  0x48   : > { %624 = vmatprep.mubr.f32.mxu0 %v1521_v0 }
  0x4b   : > { %1175 = vmatmul.mubr.msk.f32.gmra.mrb[22].mxu0 %vm440_vm1, %v337_v31 }
  0x4c   : > { %630 = vmatprep.mubr.f32.mxu0 %v1521_v0 }
  0x4f   : > { %1176 = vmatmul.mubr.msk.f32.gmra.mrb[24].mxu0 %vm440_vm1, %v338_v32 }
  0x50   : > { %636 = vmatprep.mubr.f32.mxu0 %v1521_v0 }
  0x53   : > { %1177 = vmatmul.mubr.msk.f32.gmra.mrb[26].mxu0 %vm440_vm1, %v339_v33 }
  0x54   : > { %642 = vmatprep.mubr.f32.mxu0 %v1521_v0 }
  0x57   : > { %1178 = vmatmul.mubr.msk.f32.gmra.mrb[28].mxu0 %vm440_vm1, %v340_v34 }
  0x58   : > { %648 = vmatprep.mubr.f32.mxu0 %v1521_v0 }
  0x5b   : > { %1179 = vmatmul.mubr.msk.f32.gmra.mrb[30].mxu0 %vm440_vm1, %v341_v35 }
  0x90   : > { %v361_v36 = vpop.permute.xlu0 %360  ;;  %v371_v45 = vpop.permute.xlu1 %370 }
  0x94   : > { %v366_v39 = vpop.permute.xlu0 %365  ;;  %v376_v51 = vpop.permute.xlu1 %375 }
  0x98   : > { %v381_v62 = vpop.permute.xlu0 %380  ;;  %v386_v63 = vpop.permute.xlu1 %385 }
  0x9c   : > { %v391_v11 = vpop.permute.xlu0 %390 }
  0x9d   : > { %v396_v12 = vpop.permute.xlu1 %395 }
  0xa0   : > { %v401_v23 = vpop.permute.xlu0 %400 }
  0xa1   : > { %v406_v24 = vpop.permute.xlu1 %405 }
  0xa4   : > { %v411_v35 = vpop.permute.xlu0 %410 }
  0xf2   : > { %v560_v37 = vpop.f32.mrb[0].mxu0 }
  0xf3   : > { %v562_v38 = vpop.f32.mrb[1].mxu0  ;;  %v561_v41 = vadd.f32 %v560_v37, %v361_v36 }
  0xf4   : > { %v563_v44 = vadd.f32 %v562_v38, %v361_v36  ;;  %v416_v36 = vpop.permute.xlu1 %415 }
  0xf6   : > { %v566_v40 = vpop.f32.mrb[2].mxu0 }
  0xf7   : > { %v567_v42 = vadd.f32 %v566_v40, %v366_v39  ;;  %v568_v43 = vpop.f32.mrb[3].mxu0 }
  0xf8   : > { %v569_v46 = vadd.f32 %v568_v43, %v366_v39 }
  0xf9   : > { %v1239_v47 = vpack.c.bf16 %v567_v42, %v561_v41 }
  0xfa   : > { %v572_v48 = vpop.f32.mrb[4].mxu0  ;;  %v1237_v49 = vpack.c.bf16 %v569_v46, %v563_v44 }
  0xfb   : > { %v574_v50 = vpop.f32.mrb[5].mxu0  ;;  %v573_v53 = vadd.f32 %v572_v48, %v371_v45  ;;  %v426_v48 = vpop.permute.xlu1 %425 }
  0xfc   : > { %1238 = vmatprep.subr.bf16.mxu1 %v1237_v49  ;;  %1286 = vmatprep.subr.bf16.mxu0 %v1237_v49  ;;  %v575_v56 = vadd.f32 %v574_v50, %v371_v45 }
  0xfd   : > { %1240 = vmatpush1.bf16.msra.mxu1 %v1239_v47  ;;  %1288 = vmatpush1.bf16.xpose.msra.mxu0 %v1239_v47  ;;  %v421_v47 = vpop.permute.xlu0 %420 }
  0xfe   : > { %v578_v52 = vpop.f32.mrb[6].mxu0 }
  0xff   : > { %v579_v54 = vadd.f32 %v578_v52, %v376_v51  ;;  %v580_v55 = vpop.f32.mrb[7].mxu0 }
 0x100   : > { %v581_v57 = vadd.f32 %v580_v55, %v376_v51 }
 0x101   : > { %v1243_v58 = vpack.c.bf16 %v579_v54, %v573_v53 }
 0x102   : > { %v1241_v59 = vpack.c.bf16 %v581_v57, %v575_v56  ;;  %v584_v60 = vpop.f32.mrb[8].mxu0 }
 0x103   : > { %v586_v61 = vpop.f32.mrb[9].mxu0  ;;  %v585_v2 = vadd.f32 %v584_v60, %v381_v62  ;;  %v436_v60 = vpop.permute.xlu1 %435 }
 0x104   : > { %1242 = vmatprep.subr.bf16.mxu1 %v1241_v59  ;;  %1290 = vmatprep.subr.bf16.mxu0 %v1241_v59  ;;  %v587_v5 = vadd.f32 %v586_v61, %v381_v62  ;;  %v431_v59 = vpop.permute.xlu0 %430 }
 0x105   : > { %1244 = vmatpush1.bf16.msra.mxu1 %v1243_v58  ;;  %1292 = vmatpush1.bf16.xpose.msra.mxu0 %v1243_v58 }
 0x106   : > { %v590_v1 = vpop.f32.mrb[10].mxu0 }
 0x107   : > { %v591_v3 = vadd.f32 %v590_v1, %v386_v63  ;;  %v592_v4 = vpop.f32.mrb[11].mxu0 }
 0x108   : > { %v593_v6 = vadd.f32 %v592_v4, %v386_v63 }
 0x109   : > { %v1247_v7 = vpack.c.bf16 %v591_v3, %v585_v2 }
 0x10a   : > { %v1245_v8 = vpack.c.bf16 %v593_v6, %v587_v5  ;;  %v596_v9 = vpop.f32.mrb[12].mxu0  ;;  %v655_v6 = vld [vmem:[%s1901_s3] sm:$0xff] }
 0x10b   : > { %v598_v10 = vpop.f32.mrb[13].mxu0  ;;  %v597_v14 = vadd.f32 %v596_v9, %v391_v11  ;;  %v658_v9 = vld [vmem:[%s1901_s3 + $0x18] sm:$0xff] }
 0x10c   : > { %1246 = vmatprep.subr.bf16.mxu1 %v1245_v8  ;;  %1294 = vmatprep.subr.bf16.mxu0 %v1245_v8  ;;  %v599_v17 = vadd.f32 %v598_v10, %v391_v11  ;;  %v657_v8 = vld [vmem:[%s1901_s3 + $0x10] sm:$0xff]  ;;  %v659_v10 = vld [vmem:[%s1901_s3 + $0x20] sm:$0xff]  ;;  %v660_v11 = vld [vmem:[%s1901_s3 + $0x28] sm:$0xff] }
 0x10d   : > { %1248 = vmatpush1.bf16.msra.mxu1 %v1247_v7  ;;  %1296 = vmatpush1.bf16.xpose.msra.mxu0 %v1247_v7  ;;  %v656_v7 = vld [vmem:[%s1901_s3 + $0x8] sm:$0xff] }
 0x10e   : > { %v602_v13 = vpop.f32.mrb[14].mxu0 }
 0x10f   : > { %v603_v15 = vadd.f32 %v602_v13, %v396_v12  ;;  %v604_v16 = vpop.f32.mrb[15].mxu0  ;;  %v662_v13 = vld [vmem:[%s1901_s3 + $0x38] sm:$0xff] }
 0x110   : > { %v605_v18 = vadd.f32 %v604_v16, %v396_v12  ;;  %v661_v12 = vld [vmem:[%s1901_s3 + $0x30] sm:$0xff] }
 0x111   : > { %v1251_v19 = vpack.c.bf16 %v603_v15, %v597_v14 }
 0x112   : > { %v1249_v20 = vpack.c.bf16 %v605_v18, %v599_v17  ;;  %v608_v21 = vpop.f32.mrb[16].mxu0 }
 0x113   : > { %v610_v22 = vpop.f32.mrb[17].mxu0  ;;  %v609_v26 = vadd.f32 %v608_v21, %v401_v23 }
 0x114   : > { %1250 = vmatprep.subr.bf16.mxu1 %v1249_v20  ;;  %1298 = vmatprep.subr.bf16.mxu0 %v1249_v20  ;;  %v611_v29 = vadd.f32 %v610_v22, %v401_v23 }
 0x115   : > { %1252 = vmatpush1.bf16.msra.mxu1 %v1251_v19  ;;  %1300 = vmatpush1.bf16.xpose.msra.mxu0 %v1251_v19 }
 0x116   : > { %v614_v25 = vpop.f32.mrb[18].mxu0 }
 0x117   : > { %v615_v27 = vadd.f32 %v614_v25, %v406_v24  ;;  %v616_v28 = vpop.f32.mrb[19].mxu0 }
 0x118   : > { %v617_v30 = vadd.f32 %v616_v28, %v406_v24 }
 0x119   : > { %v1255_v31 = vpack.c.bf16 %v615_v27, %v609_v26 }
 0x11a   : > { %v1253_v32 = vpack.c.bf16 %v617_v30, %v611_v29  ;;  %v620_v33 = vpop.f32.mrb[20].mxu0 }
 0x11b   : > { %v622_v34 = vpop.f32.mrb[21].mxu0  ;;  %v621_v38 = vadd.f32 %v620_v33, %v411_v35 }
 0x11c   : > { %1254 = vmatprep.subr.bf16.mxu1 %v1253_v32  ;;  %1302 = vmatprep.subr.bf16.mxu0 %v1253_v32  ;;  %v623_v41 = vadd.f32 %v622_v34, %v411_v35 }
 0x11d   : > { %1256 = vmatpush1.bf16.msra.mxu1 %v1255_v31  ;;  %1304 = vmatpush1.bf16.xpose.msra.mxu0 %v1255_v31 }
 0x11e   : > { %v626_v37 = vpop.f32.mrb[22].mxu0 }
 0x11f   : > { %v627_v39 = vadd.f32 %v626_v37, %v416_v36  ;;  %v628_v40 = vpop.f32.mrb[23].mxu0 }
 0x120   : > { %v629_v42 = vadd.f32 %v628_v40, %v416_v36 }
 0x121   : > { %v1259_v43 = vpack.c.bf16 %v627_v39, %v621_v38 }
 0x122   : > { %v1257_v44 = vpack.c.bf16 %v629_v42, %v623_v41  ;;  %v632_v45 = vpop.f32.mrb[24].mxu0 }
 0x123   : > { %v634_v46 = vpop.f32.mrb[25].mxu0  ;;  %v633_v50 = vadd.f32 %v632_v45, %v421_v47 }
 0x124   : > { %1258 = vmatprep.subr.bf16.mxu1 %v1257_v44  ;;  %1306 = vmatprep.subr.bf16.mxu0 %v1257_v44  ;;  %v635_v53 = vadd.f32 %v634_v46, %v421_v47 }
 0x125   : > { %1260 = vmatpush1.bf16.msra.mxu1 %v1259_v43  ;;  %1308 = vmatpush1.bf16.xpose.msra.mxu0 %v1259_v43 }
 0x126   : > { %v638_v49 = vpop.f32.mrb[26].mxu0 }
 0x127   : > { %v639_v51 = vadd.f32 %v638_v49, %v426_v48  ;;  %v640_v52 = vpop.f32.mrb[27].mxu0 }
 0x128   : > { %v641_v54 = vadd.f32 %v640_v52, %v426_v48 }
 0x129   : > { %v1263_v55 = vpack.c.bf16 %v639_v51, %v633_v50 }
 0x12a   : > { %v1261_v56 = vpack.c.bf16 %v641_v54, %v635_v53  ;;  %v644_v57 = vpop.f32.mrb[28].mxu0  ;;  %v792_v54 = vld [vmem:[%s1902_s4] sm:$0x1] }
 0x12b   : > { %v646_v58 = vpop.f32.mrb[29].mxu0  ;;  %v645_v62 = vadd.f32 %v644_v57, %v431_v59 }
 0x12c   : > { %1262 = vmatprep.subr.bf16.mxu1 %v1261_v56  ;;  %1310 = vmatprep.subr.bf16.mxu0 %v1261_v56  ;;  %v647_v2 = vadd.f32 %v646_v58, %v431_v59 }
 0x12d   : > { %1264 = vmatpush1.bf16.msra.mxu1 %v1263_v55  ;;  %1312 = vmatpush1.bf16.xpose.msra.mxu0 %v1263_v55 }
 0x12e   : > { %v650_v61 = vpop.f32.mrb[30].mxu0 }
 0x12f   : > { %v651_v63 = vadd.f32 %v650_v61, %v436_v60  ;;  %v652_v1 = vpop.f32.mrb[31].mxu0 }
 0x130   : > { %v653_v3 = vadd.f32 %v652_v1, %v436_v60 }
 0x131   : > { %v1267_v4 = vpack.c.bf16 %v651_v63, %v645_v62 }
 0x132   : > { %v1265_v5 = vpack.c.bf16 %v653_v3, %v647_v2 }
 0x134   : > { %1266 = vmatprep.subr.bf16.mxu1 %v1265_v5  ;;  %1314 = vmatprep.subr.bf16.mxu0 %v1265_v5 }
 0x135   : > { %1268 = vmatpush1.bf16.msra.mxu1 %v1267_v4  ;;  %1316 = vmatpush1.bf16.xpose.msra.mxu0 %v1267_v4 }
 0x138   : > { %728 = vmatmul.mubr.f32.vlgmr.msra.gmra.mrb[0].mxu1 %v655_v6 }
 0x139   : > { %733 = vmatprep.mubr.f32.mxu1 %v1521_v0 }
 0x13c   : > { %734 = vmatmul.mubr.f32.gmra.mrb[2].mxu1 %v656_v7  ;;  %v960_v7 = vld [vmem:[%s1903_s5] sm:$0xff] }
 0x13d   : > { %739 = vmatprep.mubr.f32.mxu1 %v1521_v0 }
 0x140   : > { %740 = vmatmul.mubr.f32.gmra.mrb[4].mxu1 %v657_v8  ;;  %v961_v8 = vld [vmem:[%s1903_s5 + $0x8] sm:$0xff] }
 0x141   : > { %745 = vmatprep.mubr.f32.mxu1 %v1521_v0 }
 0x144   : > { %746 = vmatmul.mubr.f32.gmra.mrb[6].mxu1 %v658_v9  ;;  %v962_v9 = vld [vmem:[%s1903_s5 + $0x10] sm:$0xff] }
 0x145   : > { %751 = vmatprep.mubr.f32.mxu1 %v1521_v0 }
 0x148   : > { %752 = vmatmul.mubr.f32.gmra.mrb[8].mxu1 %v659_v10  ;;  %v1523_v10 = vmov 0.0|0.0  }
 0x149   : > { %757 = vmatprep.mubr.f32.mxu1 %v1521_v0 }
 0x14c   : > { %758 = vmatmul.mubr.f32.gmra.mrb[10].mxu1 %v660_v11  ;;  %v1318_v11 = vpack.c.bf16 %v961_v8, %v960_v7 }
 0x14d   : > { %763 = vmatprep.mubr.f32.mxu1 %v1521_v0 }
 0x150   : > { %764 = vmatmul.mubr.f32.gmra.mrb[12].mxu1 %v661_v12  ;;  %v963_v12 = vld [vmem:[%s1903_s5 + $0x18] sm:$0xff] }
 0x151   : > { %769 = vmatprep.mubr.f32.mxu1 %v1521_v0 }
 0x154   : > { %770 = vmatmul.mubr.f32.gmra.mrb[14].mxu1 %v662_v13  ;;  %v1321_v13 = vpack.c.bf16 %v963_v12, %v962_v9 }
 0x155   : > { %861 = vmatprep.mubr.f32.mxu1 %v1521_v0 }
 0x20b   : > { %v729_v14 = vpop.f32.mrb[0].mxu1 }
 0x20c   : > { %v731_v15 = vpop.f32.mrb[1].mxu1  ;;  %1403 = vtanh.f32 %v729_v14  ;;  %v964_v14 = vld [vmem:[%s1903_s5 + $0x20] sm:$0xff] }
 0x20d   : > { %1405 = vtanh.f32 %v731_v15  ;;  %v965_v15 = vld [vmem:[%s1903_s5 + $0x28] sm:$0xff] }
 0x20f   : > { %v735_v16 = vpop.f32.mrb[2].mxu1 }
 0x210   : > { %1407 = vtanh.f32 %v735_v16  ;;  %v737_v17 = vpop.f32.mrb[3].mxu1  ;;  %v1324_v16 = vpack.c.bf16 %v965_v15, %v964_v14 }
 0x211   : > { %1409 = vtanh.f32 %v737_v17  ;;  %v966_v17 = vld [vmem:[%s1903_s5 + $0x30] sm:$0xff] }
 0x213   : > { %v741_v18 = vpop.f32.mrb[4].mxu1 }
 0x214   : > { %v743_v19 = vpop.f32.mrb[5].mxu1  ;;  %1411 = vtanh.f32 %v741_v18  ;;  %v967_v18 = vld [vmem:[%s1903_s5 + $0x38] sm:$0xff] }
 0x215   : > { %1413 = vtanh.f32 %v743_v19  ;;  %v1327_v19 = vpack.c.bf16 %v967_v18, %v966_v17 }
 0x216   : > { %v1404_v21 = vpop.eup %1403 }
 0x217   : > { %v747_v20 = vpop.f32.mrb[6].mxu1  ;;  %v1406_v23 = vpop.eup %1405 }
 0x218   : > { %1415 = vtanh.f32 %v747_v20  ;;  %v749_v22 = vpop.f32.mrb[7].mxu1  ;;  %v968_v20 = vld [vmem:[%s1903_s5 + $0x40] sm:$0xff] }
 0x219   : > { %1417 = vtanh.f32 %v749_v22 }
 0x21a   : > { %v1408_v24 = vpop.eup %1407 }
 0x21b   : > { %v1410_v25 = vpop.eup %1409  ;;  %v753_v26 = vpop.f32.mrb[8].mxu1  ;;  %v1271_v27 = vpack.c.bf16 %v1408_v24, %v1404_v21  ;;  %v969_v21 = vld [vmem:[%s1903_s5 + $0x48] sm:$0xff]  ;;  %v971_v24 = vld [vmem:[%s1903_s5 + $0x58] sm:$0xff] }
 0x21c   : > { %v755_v28 = vpop.f32.mrb[9].mxu1  ;;  %v1269_v29 = vpack.c.bf16 %v1410_v25, %v1406_v23  ;;  %1419 = vtanh.f32 %v753_v26  ;;  %v1330_v22 = vpack.c.bf16 %v969_v21, %v968_v20  ;;  %v970_v23 = vld [vmem:[%s1903_s5 + $0x50] sm:$0xff] }
 0x21d   : > { %1421 = vtanh.f32 %v755_v28  ;;  %v1333_v25 = vpack.c.bf16 %v971_v24, %v970_v23 }
 0x21e   : > { %1270 = vmatprep.subr.bf16.mxu1 %v1269_v29  ;;  %v1412_v31 = vpop.eup %1411 }
 0x21f   : > { %v759_v30 = vpop.f32.mrb[10].mxu1  ;;  %1272 = vmatpush1.bf16.msra.mxu1 %v1271_v27  ;;  %v1414_v33 = vpop.eup %1413 }
 0x220   : > { %1423 = vtanh.f32 %v759_v30  ;;  %v761_v32 = vpop.f32.mrb[11].mxu1  ;;  %v972_v30 = vld [vmem:[%s1903_s5 + $0x60] sm:$0xff] }
 0x221   : > { %1425 = vtanh.f32 %v761_v32 }
 0x222   : > { %v1416_v34 = vpop.eup %1415 }
 0x223   : > { %v1418_v35 = vpop.eup %1417  ;;  %v765_v36 = vpop.f32.mrb[12].mxu1  ;;  %v1275_v37 = vpack.c.bf16 %v1416_v34, %v1412_v31  ;;  %v973_v31 = vld [vmem:[%s1903_s5 + $0x68] sm:$0xff]  ;;  %v975_v34 = vld [vmem:[%s1903_s5 + $0x78] sm:$0xff] }
 0x224   : > { %v767_v38 = vpop.f32.mrb[13].mxu1  ;;  %v1273_v39 = vpack.c.bf16 %v1418_v35, %v1414_v33  ;;  %1427 = vtanh.f32 %v765_v36  ;;  %v1336_v32 = vpack.c.bf16 %v973_v31, %v972_v30  ;;  %v974_v33 = vld [vmem:[%s1903_s5 + $0x70] sm:$0xff] }
 0x225   : > { %1429 = vtanh.f32 %v767_v38  ;;  %v1339_v35 = vpack.c.bf16 %v975_v34, %v974_v33 }
 0x226   : > { %1274 = vmatprep.subr.bf16.mxu1 %v1273_v39  ;;  %v1420_v41 = vpop.eup %1419  ;;  %v976_v39 = vld [vmem:[%s1904_s6] sm:$0x1] }
 0x227   : > { %v771_v40 = vpop.f32.mrb[14].mxu1  ;;  %1276 = vmatpush1.bf16.msra.mxu1 %v1275_v37  ;;  %v1422_v43 = vpop.eup %1421 }
 0x228   : > { %1431 = vtanh.f32 %v771_v40  ;;  %v773_v42 = vpop.f32.mrb[15].mxu1 }
 0x229   : > { %1433 = vtanh.f32 %v773_v42 }
 0x22a   : > { %v1424_v44 = vpop.eup %1423 }
 0x22b   : > { %v1426_v45 = vpop.eup %1425  ;;  %v1279_v46 = vpack.c.bf16 %v1424_v44, %v1420_v41 }
 0x22c   : > { %v1277_v47 = vpack.c.bf16 %v1426_v45, %v1422_v43 }
 0x22e   : > { %1278 = vmatprep.subr.bf16.mxu1 %v1277_v47  ;;  %v1428_v48 = vpop.eup %1427 }
 0x22f   : > { %1280 = vmatpush1.bf16.msra.mxu1 %v1279_v46  ;;  %v1430_v49 = vpop.eup %1429 }
 0x232   : > { %v1432_v50 = vpop.eup %1431 }
 0x233   : > { %v1434_v51 = vpop.eup %1433  ;;  %v1283_v52 = vpack.c.bf16 %v1432_v50, %v1428_v48 }
 0x234   : > { %v1281_v53 = vpack.c.bf16 %v1434_v51, %v1430_v49 }
 0x236   : > { %1282 = vmatprep.subr.bf16.mxu1 %v1281_v53 }
 0x237   : > { %1284 = vmatpush1.bf16.msra.mxu1 %v1283_v52 }
 0x238   : > { %1317 = vmatprep.subr.bf16.mxu1 %v1523_v10 }
 0x23a   : > { %1180 = vmatmul.mubr.msk.f32.vlgmr.msra.gmra.mrb[16].mxu1 %vm793_vm2, %v792_v54 }
 0x23b   : > { %1319 = vmatpush3.bf16.msra.mxu1 %v1318_v11  ;;  %1234 = vmatprep.mubr.msk.f32.mxu1 %vm1524_vm4, %v1521_v0 }
 0x23c   : > { %1320 = vmatprep.subr.bf16.mxu1 %v1523_v10 }
 0x23f   : > { %1322 = vmatpush3.bf16.msra.mxu1 %v1321_v13 }
 0x240   : > { %1323 = vmatprep.subr.bf16.mxu1 %v1523_v10 }
 0x243   : > { %1325 = vmatpush3.bf16.msra.mxu1 %v1324_v16 }
 0x244   : > { %1326 = vmatprep.subr.bf16.mxu1 %v1523_v10 }
 0x247   : > { %1328 = vmatpush3.bf16.msra.mxu1 %v1327_v19 }
 0x248   : > { %1329 = vmatprep.subr.bf16.mxu1 %v1523_v10 }
 0x24b   : > { %1331 = vmatpush3.bf16.msra.mxu1 %v1330_v22 }
 0x24c   : > { %1332 = vmatprep.subr.bf16.mxu1 %v1523_v10 }
 0x24f   : > { %1334 = vmatpush3.bf16.msra.mxu1 %v1333_v25 }
 0x250   : > { %1335 = vmatprep.subr.bf16.mxu1 %v1523_v10 }
 0x253   : > { %1337 = vmatpush3.bf16.msra.mxu1 %v1336_v32 }
 0x254   : > { %1338 = vmatprep.subr.bf16.mxu1 %v1523_v10 }
 0x257   : > { %1340 = vmatpush3.bf16.msra.mxu1 %v1339_v35 }
 0x30d   : > { %v863_v55 = vpop.f32.mrb[16].mxu1 }
 0x30e   : > { %v869_v56 = vsel %vm868_vm3, %v863_v55, -inf  ;;  %v865_v57 = vpop.f32.mrb[17].mxu1 }
 0x30f   : > { %v870_v58 = vsel %vm868_vm3, %v865_v57, -inf }
 0x310   : > { %v871_v59 = vmax.f32 %v869_v56, %v870_v58 }
 0x312   : > { %872 = vmax.xlane.f32.xlu0 %v871_v59 }
 0x39f   : > { %v873_v60 = vpop.xlane.xlu0 %872 }
 0x3a0   : > { %v874_v61 = vsub.f32 %v863_v55, %v873_v60  ;;  %v875_v62 = vsub.f32 %v865_v57, %v873_v60 }
 0x3a2   : > { %v876_v63 = vmul.f32 1.442695, %v874_v61  ;;  %v878_v1 = vmul.f32 1.442695, %v875_v62 }
 0x3a4   : > { %1435 = vpow2.f32 %v876_v63 }
 0x3a5   : > { %1437 = vpow2.f32 %v878_v1 }
 0x3ae   : > { %v1436_v2 = vpop.eup %1435 }
 0x3af   : > { %v1438_v3 = vpop.eup %1437  ;;  %v880_v4 = vsel %vm868_vm3, %v1436_v2, 0.0 }
 0x3b0   : > { %v881_v5 = vsel %vm868_vm3, %v1438_v3, 0.0 }
 0x3b1   : > { %v882_v6 = vadd.f32 %v881_v5, %v880_v4 }
 0x3b3   : > { %883 = vadd.xlane.f32.xlu1 %v882_v6 }
 0x440   : > { %v884_v26 = vpop.xlane.xlu1 %883 }
 0x441   : > { %1439 = vrcp.f32 %v884_v26 }
 0x44b   : > { %v1440_v27 = vpop.eup %1439 }
 0x44c   : > { %v886_v28 = vmul.f32 %v1440_v27, %v1436_v2  ;;  %v887_v29 = vmul.f32 %v1440_v27, %v1438_v3 }
 0x44e   : > { %952 = vmatprep.mubr.f32.mxu0 %v887_v29 }
 0x44f   : > { %953 = vmatmul.mubr.f32.vlgmr.msra.gmra.mrb[32].mxu0 %v886_v28 }
 0x522   : > { %v954_v36 = vpop.f32.mrb[32].mxu0 }
 0x523   : > { %958 = vst [vmem:[#allocation2] sm:$0x1] %v954_v36  ;;  %v956_v37 = vpop.f32.mrb[33].mxu0 }
 0x52a   : > { %v959_v38 = vld [vmem:[#allocation2] sm:$0x1] }
 0x52b   : > { %1235 = vmatmul.mubr.f32.vlgmr.msra.gmra.mrb[18].mxu1 %v959_v38 }
 0x5fe   : > { %v1043_v40 = vpop.f32.mrb[18].mxu1 }
 0x5ff   : > { %v1044_v41 = vadd.f32 %v1043_v40, %v976_v39  ;;  %v1236_v42 = vpop.f32.mrb[19].mxu1 }
 0x601   : > { %1047 = vst [vmem:[%s308_s21] sm:$0x1] %v1044_v41 }
 0x602   : > { %1454 = shalt.err (!%p1451_p5)
}
 0x603   : > { %s1455_s17 = scalar_lea.hbm %s1851_s8, 16  ;;  %s1459_s20 = scalar_lea.hbm %s1905_s7, 32 }
 0x604   : > { %p1456_p6 = scmp.ne.s32.totalorder %s1851_s8, %s1455_s17  ;;  %p1460_p10 = scmp.lt.u32.totalorder %s1851_s8, %s1905_s7 }
 0x605   : > { %p1461_p11 = scmp.lt.u32.totalorder %s1459_s20, %s1455_s17  ;;  %p1463_p13 = scmp.lt.u32.totalorder %s1455_s17, %s1851_s8 }
 0x606   : > { %p1457_p7 = pnand %p1456_p6, %p1606_p4 }
 0x607   : > { %p1462_p12 = por %p1461_p11, %p1460_p10 }
 0x608   : > { %p1458_p9 = pneg %p1457_p7 }
 0x609   : > { %p1464_p0 = por %p1463_p13, %p1462_p12 }
 0x60b   : > { %p1465_p1 = pnand %p1464_p0, %p1458_p9 }
 0x60d   : > { %1468 = shalt.err (!%p1465_p1)
}
 0x60e   : > { %1341 = dma.vmem_to_hbm [thread:$0]  (%p1606_p4), %s1853_s22, 16, %s1851_s8, %s1049_s10  }
 0x60f PF: > { %p1347_p2 = scmp.ge.s32.totalorder %s1519_s29, 2  ;;  %s1074_s30 = sand.u32 1, %s1499_s24  }
 0x610   : > { %s1075_s12 = scalar_lea.sflag [#allocation4], %s1074_s30 }
 0x611   : > { %p1344_p3 = pnand %p1347_p2, %p1613_p8 }
 0x613   : > { %1494 = dma.done.wait (!%p1344_p3), %s1075_s12, 16  }
 0x614   : > { %1496 = vsyncadd (!%p1344_p3), %s1075_s12, 4294967280  ;;  %s20_s29 = sadd.s32 1, %s1519_s29   ;;  %s1908_s24 = smov %s1503_s25 }
 0x615   : > { %p17_p5 = scmp.ge.s32.totalorder %s20_s29, 4   ;;  %s1909_s25 = smov %s1507_s26 }
 0x616   : > { %s1910_s26 = smov %s1619_s14  ;;  %s1911_s27 = smov %s1515_s28 }
 0x617   : > { %s1912_s28 = smov %s1914_s9  ;;  %19 = sbr.rel (!%p17_p5) target bundleno = 4 (0x4), region = 93 }
 0x61e   :  { %1079 = vsyncpa [#allocation4], 1 }
 0x61f   :  { %1081 = vsyncpa [#allocation4 + $0x1], 1 }

</bundles_post_ra>
